<compile_context>
chip_gen: v6e
topology: v6e:2x2x1
jax: 0.10.0
libtpu: 0.0.40
codegen_flags: <defaults>
</compile_context>

<pallas_src>
import functools

import jax
import jax.numpy as jnp
from jax.experimental import pallas as pl
from jax.experimental.pallas import tpu as pltpu

S = 4                 # grid size
B = 2                 # boxes per cell
NCLS = 4              # number of classes
D = 5 * B + NCLS      # = 14 channels per cell

LANE = 128            # lane width
ROWS_PER_BLOCK = 256  # sublane-rows of 128 cells per grid step (32768 cells)


def _iou_cwh(bx, by, bw, bh, tx, ty, tw, th):
    """IoU of (cx, cy, w, h) boxes; all args share an arbitrary dense shape."""
    b_x1, b_x2 = bx - bw * 0.5, bx + bw * 0.5
    b_y1, b_y2 = by - bh * 0.5, by + bh * 0.5
    t_x1, t_x2 = tx - tw * 0.5, tx + tw * 0.5
    t_y1, t_y2 = ty - th * 0.5, ty + th * 0.5
    ix = jnp.maximum(jnp.minimum(b_x2, t_x2) - jnp.maximum(b_x1, t_x1), 0.0)
    iy = jnp.maximum(jnp.minimum(b_y2, t_y2) - jnp.maximum(b_y1, t_y1), 0.0)
    inter = ix * iy
    union = bw * bh + tw * th - inter
    return inter / (union + 1e-6)


def _per_cell_loss(p, t):
    """Per-cell YOLO-v1 loss from per-channel arrays.

    p, t: sequences of D arrays (one per channel), all the same dense shape.
    Returns an array of that shape with the per-cell loss contribution.
    Math mirrors the PyTorch module exactly (including its use of target
    channels 5:9 in the second-box branch).
    """
    iou1 = _iou_cwh(p[0], p[1], p[2], p[3], t[0], t[1], t[2], t[3])
    iou2 = _iou_cwh(p[5], p[6], p[7], p[8], t[0], t[1], t[2], t[3])
    use1 = iou1 > iou2                      # strict '>' as in the module

    xy1 = 5.0 * ((t[0] - p[0]) ** 2 + (t[1] - p[1]) ** 2)
    xy2 = 5.0 * ((t[5] - p[5]) ** 2 + (t[6] - p[6]) ** 2)
    wh1 = ((jnp.sqrt(t[2]) - jnp.sqrt(p[2])) ** 2
           + (jnp.sqrt(t[3]) - jnp.sqrt(p[3])) ** 2)
    wh2 = ((jnp.sqrt(t[7]) - jnp.sqrt(p[7])) ** 2
           + (jnp.sqrt(t[8]) - jnp.sqrt(p[8])) ** 2)
    obj1 = (iou1 - p[4]) ** 2
    obj2 = (iou2 - p[9]) ** 2
    nob1 = 0.5 * p[9] * p[9]                # other box's confidence penalized
    nob2 = 0.5 * p[4] * p[4]

    # Class term as explicit adds over dense rows (no tiny-minor-axis reduce).
    cls = (t[10] - p[10]) ** 2
    for c in range(11, D):
        cls = cls + (t[c] - p[c]) ** 2

    obj_cell = jnp.where(use1,
                         xy1 + wh1 + obj1 + nob1,
                         xy2 + wh2 + obj2 + nob2) + cls
    noobj_cell = 0.5 * (p[4] * p[4] + p[9] * p[9])

    has_obj = t[4] == 1.0
    return jnp.where(has_obj, obj_cell, noobj_cell)


def _yolo_loss_kernel(p_ref, t_ref, out_ref, *, chunk):
    # p_ref, t_ref: (D, TB, 128) channel-major blocks; out_ref: (8, 128)
    # lane-dense per-block partial sums.  The block is streamed in
    # `chunk`-sublane-row slices so only ~2*D + ~12 vregs are live at a time
    # (no register spills on v7x), and the sum over cells folds into an
    # (8, 128) accumulator with plain VALU adds (no in-kernel cross-lane
    # reduce, no per-cell output round trip to HBM).
    tb = p_ref.shape[1]
    nchunks = tb // chunk

    def body(ci, acc):
        r = pl.multiple_of(ci * chunk, chunk)
        p = [p_ref[c, pl.ds(r, chunk), :].astype(jnp.float32) for c in range(D)]
        t = [t_ref[c, pl.ds(r, chunk), :].astype(jnp.float32) for c in range(D)]
        loss = _per_cell_loss(p, t)                  # (chunk, 128) f32
        part = loss[0:8, :]
        for rr in range(8, chunk, 8):                # chunk is 8 (f32) / 16 (bf16)
            part = part + loss[rr:rr + 8, :]
        return acc + part

    acc0 = jnp.zeros((8, LANE), jnp.float32)
    out_ref[...] = jax.lax.fori_loop(0, nchunks, body, acc0,
                                     unroll=min(4, nchunks))


def yolo_loss_pallas(preds, targets, *, rows_per_block=ROWS_PER_BLOCK):
    """YOLO-v1 loss. Call under jax.jit so the relayout fuses into one copy."""
    n, s, _, d = preds.shape
    ncell = n * s * s

    # Keep bf16 inputs in bf16 through the DMA (halves HBM bytes for a
    # memory-bound kernel); everything else streams as f32.  The kernel
    # up-casts each channel slab to f32 right after the load.
    if preds.dtype == jnp.bfloat16 and targets.dtype == jnp.bfloat16:
        io_dtype, gran = jnp.bfloat16, 16            # bf16 sublane tile = 16
    else:
        io_dtype, gran = jnp.float32, 8
    chunk = gran

    # --- tile sizing -------------------------------------------------------
    rows = pl.cdiv(ncell, LANE)                      # lane-rows of 128 cells
    rpb = max(gran, (rows_per_block // gran) * gran)
    # Target >= 2 grid blocks whenever possible so both v7x TensorCores get
    # work on the "parallel" grid axis; cap the block at rows_per_block
    # (256 rows ~= 7 MiB double-buffered => fits v5e's 16 MiB scoped VMEM).
    tb = max(gran, min(rpb, pl.cdiv(pl.cdiv(rows, 2), gran) * gran))
    rows_pad = pl.cdiv(rows, tb) * tb
    grid = rows_pad // tb
    ncell_pad = rows_pad * LANE

    # --- relayout (pad + cast + transpose fuse into one XLA copy under jit) -
    p = preds.reshape(ncell, d).astype(io_dtype)
    t = targets.reshape(ncell, d).astype(io_dtype)
    if ncell_pad > ncell:
        pad = ncell_pad - ncell
        # Zero padding => t[4]=0 and p[4]=p[9]=0 -> padded cells contribute 0.
        p = jnp.pad(p, ((0, pad), (0, 0)))
        t = jnp.pad(t, ((0, pad), (0, 0)))
    pc = p.T.reshape(d, rows_pad, LANE)              # channel-major, lane-dense
    tc = t.T.reshape(d, rows_pad, LANE)

    partials = pl.pallas_call(
        functools.partial(_yolo_loss_kernel, chunk=chunk),
        out_shape=jax.ShapeDtypeStruct((grid * 8, LANE), jnp.float32),
        grid=(grid,),
        in_specs=[
            pl.BlockSpec((d, tb, LANE), lambda i: (0, i, 0)),
            pl.BlockSpec((d, tb, LANE), lambda i: (0, i, 0)),
        ],
        out_specs=pl.BlockSpec((8, LANE), lambda i: (i, 0)),
        compiler_params=pltpu.CompilerParams(
            dimension_semantics=("parallel",)),      # independent output blocks
    )(pc, tc)

    # Tiny final reduction over (grid*8, 128); padded cells are exactly zero.
    return jnp.sum(partials) / n


def yolo_loss_ref(preds, targets):
    """Pure-JAX reference (vectorized, identical math)."""
    n = preds.shape[0]
    p = preds.reshape(-1, D).astype(jnp.float32)
    t = targets.reshape(-1, D).astype(jnp.float32)
    cell = _per_cell_loss([p[:, c] for c in range(D)],
                          [t[:, c] for c in range(D)])
    return jnp.sum(cell) / n


if __name__ == "__main__":
    key = jax.random.PRNGKey(0)
    k1, k2, k3 = jax.random.split(key, 3)

    N = 2
    # Positive values so the sqrt terms are well-defined (as the real YOLO
    # training setup assumes).
    preds = jax.random.uniform(k1, (N, S, S, D), jnp.float32,
                               minval=0.05, maxval=0.95)
    targets = jax.random.uniform(k2, (N, S, S, D), jnp.float32,
                                 minval=0.05, maxval=0.95)
    # Objectness indicator must be exactly 0.0 or 1.0 (module tests == 1).
    conf = (jax.random.uniform(k3, (N, S, S)) > 0.5).astype(jnp.float32)
    targets = targets.at[..., 4].set(conf)

    loss_fn = jax.jit(yolo_loss_pallas)
    out = loss_fn(preds, targets)
    jax.block_until_ready(out)

    ref = yolo_loss_ref(preds, targets)
    assert jnp.allclose(out, ref, rtol=1e-5, atol=1e-5), (out, ref)
    print("KERNEL_OK")
</pallas_src>

<mosaic_0001>
module attributes {stable_mosaic.version = 11 : i64} {
  func.func @_yolo_loss_kernel(%arg0: i32, %arg1: memref<14x8x128xf32, #tpu.memory_space<vmem>>, %arg2: memref<14x8x128xf32, #tpu.memory_space<vmem>>, %arg3: memref<8x128xf32, #tpu.memory_space<vmem>>) attributes {dimension_semantics = [#tpu.dimension_semantics<parallel>], iteration_bounds = array<i64: 1>, scalar_prefetch = 0 : i64, scratch_operands = 0 : i64, tpu.core_type = #tpu.core_type<tc>, window_params = [{transform_indices = @transform_0, window_bounds = array<i64: 14, 8, 128>}, {transform_indices = @transform_1, window_bounds = array<i64: 14, 8, 128>}, {transform_indices = @transform_2, window_bounds = array<i64: 8, 128>}]} {
    %cst = arith.constant 0.000000e+00 : f32
    %0 = vector.broadcast %cst : f32 to vector<8x128xf32>
    %c0_i32 = arith.constant 0 : i32
    %c8_i32 = arith.constant 8 : i32
    %1 = arith.muli %c0_i32, %c8_i32 : i32
    %2 = tpu.assume_multiple %1, 8 : i32
    %c0 = arith.constant 0 : index
    %3 = arith.index_cast %2 : i32 to index
    %c0_0 = arith.constant 0 : index
    %4 = vector.load %arg1[%c0, %3, %c0_0] : memref<14x8x128xf32, #tpu.memory_space<vmem>>, vector<1x8x128xf32>
    %5 = vector.shape_cast %4 : vector<1x8x128xf32> to vector<8x128xf32>
    %c1 = arith.constant 1 : index
    %6 = arith.index_cast %2 : i32 to index
    %c0_1 = arith.constant 0 : index
    %7 = vector.load %arg1[%c1, %6, %c0_1] : memref<14x8x128xf32, #tpu.memory_space<vmem>>, vector<1x8x128xf32>
    %8 = vector.shape_cast %7 : vector<1x8x128xf32> to vector<8x128xf32>
    %c2 = arith.constant 2 : index
    %9 = arith.index_cast %2 : i32 to index
    %c0_2 = arith.constant 0 : index
    %10 = vector.load %arg1[%c2, %9, %c0_2] : memref<14x8x128xf32, #tpu.memory_space<vmem>>, vector<1x8x128xf32>
    %11 = vector.shape_cast %10 : vector<1x8x128xf32> to vector<8x128xf32>
    %c3 = arith.constant 3 : index
    %12 = arith.index_cast %2 : i32 to index
    %c0_3 = arith.constant 0 : index
    %13 = vector.load %arg1[%c3, %12, %c0_3] : memref<14x8x128xf32, #tpu.memory_space<vmem>>, vector<1x8x128xf32>
    %14 = vector.shape_cast %13 : vector<1x8x128xf32> to vector<8x128xf32>
    %c4 = arith.constant 4 : index
    %15 = arith.index_cast %2 : i32 to index
    %c0_4 = arith.constant 0 : index
    %16 = vector.load %arg1[%c4, %15, %c0_4] : memref<14x8x128xf32, #tpu.memory_space<vmem>>, vector<1x8x128xf32>
    %17 = vector.shape_cast %16 : vector<1x8x128xf32> to vector<8x128xf32>
    %c5 = arith.constant 5 : index
    %18 = arith.index_cast %2 : i32 to index
    %c0_5 = arith.constant 0 : index
    %19 = vector.load %arg1[%c5, %18, %c0_5] : memref<14x8x128xf32, #tpu.memory_space<vmem>>, vector<1x8x128xf32>
    %20 = vector.shape_cast %19 : vector<1x8x128xf32> to vector<8x128xf32>
    %c6 = arith.constant 6 : index
    %21 = arith.index_cast %2 : i32 to index
    %c0_6 = arith.constant 0 : index
    %22 = vector.load %arg1[%c6, %21, %c0_6] : memref<14x8x128xf32, #tpu.memory_space<vmem>>, vector<1x8x128xf32>
    %23 = vector.shape_cast %22 : vector<1x8x128xf32> to vector<8x128xf32>
    %c7 = arith.constant 7 : index
    %24 = arith.index_cast %2 : i32 to index
    %c0_7 = arith.constant 0 : index
    %25 = vector.load %arg1[%c7, %24, %c0_7] : memref<14x8x128xf32, #tpu.memory_space<vmem>>, vector<1x8x128xf32>
    %26 = vector.shape_cast %25 : vector<1x8x128xf32> to vector<8x128xf32>
    %c8 = arith.constant 8 : index
    %27 = arith.index_cast %2 : i32 to index
    %c0_8 = arith.constant 0 : index
    %28 = vector.load %arg1[%c8, %27, %c0_8] : memref<14x8x128xf32, #tpu.memory_space<vmem>>, vector<1x8x128xf32>
    %29 = vector.shape_cast %28 : vector<1x8x128xf32> to vector<8x128xf32>
    %c9 = arith.constant 9 : index
    %30 = arith.index_cast %2 : i32 to index
    %c0_9 = arith.constant 0 : index
    %31 = vector.load %arg1[%c9, %30, %c0_9] : memref<14x8x128xf32, #tpu.memory_space<vmem>>, vector<1x8x128xf32>
    %32 = vector.shape_cast %31 : vector<1x8x128xf32> to vector<8x128xf32>
    %c10 = arith.constant 10 : index
    %33 = arith.index_cast %2 : i32 to index
    %c0_10 = arith.constant 0 : index
    %34 = vector.load %arg1[%c10, %33, %c0_10] : memref<14x8x128xf32, #tpu.memory_space<vmem>>, vector<1x8x128xf32>
    %35 = vector.shape_cast %34 : vector<1x8x128xf32> to vector<8x128xf32>
    %c11 = arith.constant 11 : index
    %36 = arith.index_cast %2 : i32 to index
    %c0_11 = arith.constant 0 : index
    %37 = vector.load %arg1[%c11, %36, %c0_11] : memref<14x8x128xf32, #tpu.memory_space<vmem>>, vector<1x8x128xf32>
    %38 = vector.shape_cast %37 : vector<1x8x128xf32> to vector<8x128xf32>
    %c12 = arith.constant 12 : index
    %39 = arith.index_cast %2 : i32 to index
    %c0_12 = arith.constant 0 : index
    %40 = vector.load %arg1[%c12, %39, %c0_12] : memref<14x8x128xf32, #tpu.memory_space<vmem>>, vector<1x8x128xf32>
    %41 = vector.shape_cast %40 : vector<1x8x128xf32> to vector<8x128xf32>
    %c13 = arith.constant 13 : index
    %42 = arith.index_cast %2 : i32 to index
    %c0_13 = arith.constant 0 : index
    %43 = vector.load %arg1[%c13, %42, %c0_13] : memref<14x8x128xf32, #tpu.memory_space<vmem>>, vector<1x8x128xf32>
    %44 = vector.shape_cast %43 : vector<1x8x128xf32> to vector<8x128xf32>
    %c0_14 = arith.constant 0 : index
    %45 = arith.index_cast %2 : i32 to index
    %c0_15 = arith.constant 0 : index
    %46 = vector.load %arg2[%c0_14, %45, %c0_15] : memref<14x8x128xf32, #tpu.memory_space<vmem>>, vector<1x8x128xf32>
    %47 = vector.shape_cast %46 : vector<1x8x128xf32> to vector<8x128xf32>
    %c1_16 = arith.constant 1 : index
    %48 = arith.index_cast %2 : i32 to index
    %c0_17 = arith.constant 0 : index
    %49 = vector.load %arg2[%c1_16, %48, %c0_17] : memref<14x8x128xf32, #tpu.memory_space<vmem>>, vector<1x8x128xf32>
    %50 = vector.shape_cast %49 : vector<1x8x128xf32> to vector<8x128xf32>
    %c2_18 = arith.constant 2 : index
    %51 = arith.index_cast %2 : i32 to index
    %c0_19 = arith.constant 0 : index
    %52 = vector.load %arg2[%c2_18, %51, %c0_19] : memref<14x8x128xf32, #tpu.memory_space<vmem>>, vector<1x8x128xf32>
    %53 = vector.shape_cast %52 : vector<1x8x128xf32> to vector<8x128xf32>
    %c3_20 = arith.constant 3 : index
    %54 = arith.index_cast %2 : i32 to index
    %c0_21 = arith.constant 0 : index
    %55 = vector.load %arg2[%c3_20, %54, %c0_21] : memref<14x8x128xf32, #tpu.memory_space<vmem>>, vector<1x8x128xf32>
    %56 = vector.shape_cast %55 : vector<1x8x128xf32> to vector<8x128xf32>
    %c4_22 = arith.constant 4 : index
    %57 = arith.index_cast %2 : i32 to index
    %c0_23 = arith.constant 0 : index
    %58 = vector.load %arg2[%c4_22, %57, %c0_23] : memref<14x8x128xf32, #tpu.memory_space<vmem>>, vector<1x8x128xf32>
    %59 = vector.shape_cast %58 : vector<1x8x128xf32> to vector<8x128xf32>
    %c5_24 = arith.constant 5 : index
    %60 = arith.index_cast %2 : i32 to index
    %c0_25 = arith.constant 0 : index
    %61 = vector.load %arg2[%c5_24, %60, %c0_25] : memref<14x8x128xf32, #tpu.memory_space<vmem>>, vector<1x8x128xf32>
    %62 = vector.shape_cast %61 : vector<1x8x128xf32> to vector<8x128xf32>
    %c6_26 = arith.constant 6 : index
    %63 = arith.index_cast %2 : i32 to index
    %c0_27 = arith.constant 0 : index
    %64 = vector.load %arg2[%c6_26, %63, %c0_27] : memref<14x8x128xf32, #tpu.memory_space<vmem>>, vector<1x8x128xf32>
    %65 = vector.shape_cast %64 : vector<1x8x128xf32> to vector<8x128xf32>
    %c7_28 = arith.constant 7 : index
    %66 = arith.index_cast %2 : i32 to index
    %c0_29 = arith.constant 0 : index
    %67 = vector.load %arg2[%c7_28, %66, %c0_29] : memref<14x8x128xf32, #tpu.memory_space<vmem>>, vector<1x8x128xf32>
    %68 = vector.shape_cast %67 : vector<1x8x128xf32> to vector<8x128xf32>
    %c8_30 = arith.constant 8 : index
    %69 = arith.index_cast %2 : i32 to index
    %c0_31 = arith.constant 0 : index
    %70 = vector.load %arg2[%c8_30, %69, %c0_31] : memref<14x8x128xf32, #tpu.memory_space<vmem>>, vector<1x8x128xf32>
    %71 = vector.shape_cast %70 : vector<1x8x128xf32> to vector<8x128xf32>
    %c10_32 = arith.constant 10 : index
    %72 = arith.index_cast %2 : i32 to index
    %c0_33 = arith.constant 0 : index
    %73 = vector.load %arg2[%c10_32, %72, %c0_33] : memref<14x8x128xf32, #tpu.memory_space<vmem>>, vector<1x8x128xf32>
    %74 = vector.shape_cast %73 : vector<1x8x128xf32> to vector<8x128xf32>
    %c11_34 = arith.constant 11 : index
    %75 = arith.index_cast %2 : i32 to index
    %c0_35 = arith.constant 0 : index
    %76 = vector.load %arg2[%c11_34, %75, %c0_35] : memref<14x8x128xf32, #tpu.memory_space<vmem>>, vector<1x8x128xf32>
    %77 = vector.shape_cast %76 : vector<1x8x128xf32> to vector<8x128xf32>
    %c12_36 = arith.constant 12 : index
    %78 = arith.index_cast %2 : i32 to index
    %c0_37 = arith.constant 0 : index
    %79 = vector.load %arg2[%c12_36, %78, %c0_37] : memref<14x8x128xf32, #tpu.memory_space<vmem>>, vector<1x8x128xf32>
    %80 = vector.shape_cast %79 : vector<1x8x128xf32> to vector<8x128xf32>
    %c13_38 = arith.constant 13 : index
    %81 = arith.index_cast %2 : i32 to index
    %c0_39 = arith.constant 0 : index
    %82 = vector.load %arg2[%c13_38, %81, %c0_39] : memref<14x8x128xf32, #tpu.memory_space<vmem>>, vector<1x8x128xf32>
    %83 = vector.shape_cast %82 : vector<1x8x128xf32> to vector<8x128xf32>
    %cst_40 = arith.constant 5.000000e-01 : f32
    %84 = vector.broadcast %cst_40 : f32 to vector<8x128xf32>
    %85 = arith.mulf %11, %84 : vector<8x128xf32>
    %86 = arith.subf %5, %85 : vector<8x128xf32>
    %cst_41 = arith.constant 5.000000e-01 : f32
    %87 = vector.broadcast %cst_41 : f32 to vector<8x128xf32>
    %88 = arith.mulf %11, %87 : vector<8x128xf32>
    %89 = arith.addf %5, %88 : vector<8x128xf32>
    %cst_42 = arith.constant 5.000000e-01 : f32
    %90 = vector.broadcast %cst_42 : f32 to vector<8x128xf32>
    %91 = arith.mulf %14, %90 : vector<8x128xf32>
    %92 = arith.subf %8, %91 : vector<8x128xf32>
    %cst_43 = arith.constant 5.000000e-01 : f32
    %93 = vector.broadcast %cst_43 : f32 to vector<8x128xf32>
    %94 = arith.mulf %14, %93 : vector<8x128xf32>
    %95 = arith.addf %8, %94 : vector<8x128xf32>
    %cst_44 = arith.constant 5.000000e-01 : f32
    %96 = vector.broadcast %cst_44 : f32 to vector<8x128xf32>
    %97 = arith.mulf %53, %96 : vector<8x128xf32>
    %98 = arith.subf %47, %97 : vector<8x128xf32>
    %cst_45 = arith.constant 5.000000e-01 : f32
    %99 = vector.broadcast %cst_45 : f32 to vector<8x128xf32>
    %100 = arith.mulf %53, %99 : vector<8x128xf32>
    %101 = arith.addf %47, %100 : vector<8x128xf32>
    %cst_46 = arith.constant 5.000000e-01 : f32
    %102 = vector.broadcast %cst_46 : f32 to vector<8x128xf32>
    %103 = arith.mulf %56, %102 : vector<8x128xf32>
    %104 = arith.subf %50, %103 : vector<8x128xf32>
    %cst_47 = arith.constant 5.000000e-01 : f32
    %105 = vector.broadcast %cst_47 : f32 to vector<8x128xf32>
    %106 = arith.mulf %56, %105 : vector<8x128xf32>
    %107 = arith.addf %50, %106 : vector<8x128xf32>
    %108 = arith.minimumf %89, %101 : vector<8x128xf32>
    %109 = arith.maximumf %86, %98 : vector<8x128xf32>
    %110 = arith.subf %108, %109 : vector<8x128xf32>
    %cst_48 = arith.constant 0.000000e+00 : f32
    %111 = vector.broadcast %cst_48 : f32 to vector<8x128xf32>
    %112 = arith.maximumf %110, %111 : vector<8x128xf32>
    %113 = arith.minimumf %95, %107 : vector<8x128xf32>
    %114 = arith.maximumf %92, %104 : vector<8x128xf32>
    %115 = arith.subf %113, %114 : vector<8x128xf32>
    %cst_49 = arith.constant 0.000000e+00 : f32
    %116 = vector.broadcast %cst_49 : f32 to vector<8x128xf32>
    %117 = arith.maximumf %115, %116 : vector<8x128xf32>
    %118 = arith.mulf %112, %117 : vector<8x128xf32>
    %119 = arith.mulf %11, %14 : vector<8x128xf32>
    %120 = arith.mulf %53, %56 : vector<8x128xf32>
    %121 = arith.addf %119, %120 : vector<8x128xf32>
    %122 = arith.subf %121, %118 : vector<8x128xf32>
    %cst_50 = arith.constant 9.99999997E-7 : f32
    %123 = vector.broadcast %cst_50 : f32 to vector<8x128xf32>
    %124 = arith.addf %122, %123 : vector<8x128xf32>
    %125 = arith.divf %118, %124 : vector<8x128xf32>
    %cst_51 = arith.constant 5.000000e-01 : f32
    %126 = vector.broadcast %cst_51 : f32 to vector<8x128xf32>
    %127 = arith.mulf %26, %126 : vector<8x128xf32>
    %128 = arith.subf %20, %127 : vector<8x128xf32>
    %cst_52 = arith.constant 5.000000e-01 : f32
    %129 = vector.broadcast %cst_52 : f32 to vector<8x128xf32>
    %130 = arith.mulf %26, %129 : vector<8x128xf32>
    %131 = arith.addf %20, %130 : vector<8x128xf32>
    %cst_53 = arith.constant 5.000000e-01 : f32
    %132 = vector.broadcast %cst_53 : f32 to vector<8x128xf32>
    %133 = arith.mulf %29, %132 : vector<8x128xf32>
    %134 = arith.subf %23, %133 : vector<8x128xf32>
    %cst_54 = arith.constant 5.000000e-01 : f32
    %135 = vector.broadcast %cst_54 : f32 to vector<8x128xf32>
    %136 = arith.mulf %29, %135 : vector<8x128xf32>
    %137 = arith.addf %23, %136 : vector<8x128xf32>
    %cst_55 = arith.constant 5.000000e-01 : f32
    %138 = vector.broadcast %cst_55 : f32 to vector<8x128xf32>
    %139 = arith.mulf %53, %138 : vector<8x128xf32>
    %140 = arith.subf %47, %139 : vector<8x128xf32>
    %cst_56 = arith.constant 5.000000e-01 : f32
    %141 = vector.broadcast %cst_56 : f32 to vector<8x128xf32>
    %142 = arith.mulf %53, %141 : vector<8x128xf32>
    %143 = arith.addf %47, %142 : vector<8x128xf32>
    %cst_57 = arith.constant 5.000000e-01 : f32
    %144 = vector.broadcast %cst_57 : f32 to vector<8x128xf32>
    %145 = arith.mulf %56, %144 : vector<8x128xf32>
    %146 = arith.subf %50, %145 : vector<8x128xf32>
    %cst_58 = arith.constant 5.000000e-01 : f32
    %147 = vector.broadcast %cst_58 : f32 to vector<8x128xf32>
    %148 = arith.mulf %56, %147 : vector<8x128xf32>
    %149 = arith.addf %50, %148 : vector<8x128xf32>
    %150 = arith.minimumf %131, %143 : vector<8x128xf32>
    %151 = arith.maximumf %128, %140 : vector<8x128xf32>
    %152 = arith.subf %150, %151 : vector<8x128xf32>
    %cst_59 = arith.constant 0.000000e+00 : f32
    %153 = vector.broadcast %cst_59 : f32 to vector<8x128xf32>
    %154 = arith.maximumf %152, %153 : vector<8x128xf32>
    %155 = arith.minimumf %137, %149 : vector<8x128xf32>
    %156 = arith.maximumf %134, %146 : vector<8x128xf32>
    %157 = arith.subf %155, %156 : vector<8x128xf32>
    %cst_60 = arith.constant 0.000000e+00 : f32
    %158 = vector.broadcast %cst_60 : f32 to vector<8x128xf32>
    %159 = arith.maximumf %157, %158 : vector<8x128xf32>
    %160 = arith.mulf %154, %159 : vector<8x128xf32>
    %161 = arith.mulf %26, %29 : vector<8x128xf32>
    %162 = arith.mulf %53, %56 : vector<8x128xf32>
    %163 = arith.addf %161, %162 : vector<8x128xf32>
    %164 = arith.subf %163, %160 : vector<8x128xf32>
    %cst_61 = arith.constant 9.99999997E-7 : f32
    %165 = vector.broadcast %cst_61 : f32 to vector<8x128xf32>
    %166 = arith.addf %164, %165 : vector<8x128xf32>
    %167 = arith.divf %160, %166 : vector<8x128xf32>
    %168 = arith.cmpf ogt, %125, %167 : vector<8x128xf32>
    %169 = arith.subf %47, %5 : vector<8x128xf32>
    %170 = arith.mulf %169, %169 : vector<8x128xf32>
    %171 = arith.subf %50, %8 : vector<8x128xf32>
    %172 = arith.mulf %171, %171 : vector<8x128xf32>
    %173 = arith.addf %170, %172 : vector<8x128xf32>
    %cst_62 = arith.constant 5.000000e+00 : f32
    %174 = vector.broadcast %cst_62 : f32 to vector<8x128xf32>
    %175 = arith.mulf %174, %173 : vector<8x128xf32>
    %176 = arith.subf %62, %20 : vector<8x128xf32>
    %177 = arith.mulf %176, %176 : vector<8x128xf32>
    %178 = arith.subf %65, %23 : vector<8x128xf32>
    %179 = arith.mulf %178, %178 : vector<8x128xf32>
    %180 = arith.addf %177, %179 : vector<8x128xf32>
    %cst_63 = arith.constant 5.000000e+00 : f32
    %181 = vector.broadcast %cst_63 : f32 to vector<8x128xf32>
    %182 = arith.mulf %181, %180 : vector<8x128xf32>
    %183 = math.sqrt %53 : vector<8x128xf32>
    %184 = math.sqrt %11 : vector<8x128xf32>
    %185 = arith.subf %183, %184 : vector<8x128xf32>
    %186 = arith.mulf %185, %185 : vector<8x128xf32>
    %187 = math.sqrt %56 : vector<8x128xf32>
    %188 = math.sqrt %14 : vector<8x128xf32>
    %189 = arith.subf %187, %188 : vector<8x128xf32>
    %190 = arith.mulf %189, %189 : vector<8x128xf32>
    %191 = arith.addf %186, %190 : vector<8x128xf32>
    %192 = math.sqrt %68 : vector<8x128xf32>
    %193 = math.sqrt %26 : vector<8x128xf32>
    %194 = arith.subf %192, %193 : vector<8x128xf32>
    %195 = arith.mulf %194, %194 : vector<8x128xf32>
    %196 = math.sqrt %71 : vector<8x128xf32>
    %197 = math.sqrt %29 : vector<8x128xf32>
    %198 = arith.subf %196, %197 : vector<8x128xf32>
    %199 = arith.mulf %198, %198 : vector<8x128xf32>
    %200 = arith.addf %195, %199 : vector<8x128xf32>
    %201 = arith.subf %125, %17 : vector<8x128xf32>
    %202 = arith.mulf %201, %201 : vector<8x128xf32>
    %203 = arith.subf %167, %32 : vector<8x128xf32>
    %204 = arith.mulf %203, %203 : vector<8x128xf32>
    %cst_64 = arith.constant 5.000000e-01 : f32
    %205 = vector.broadcast %cst_64 : f32 to vector<8x128xf32>
    %206 = arith.mulf %205, %32 : vector<8x128xf32>
    %207 = arith.mulf %206, %32 : vector<8x128xf32>
    %cst_65 = arith.constant 5.000000e-01 : f32
    %208 = vector.broadcast %cst_65 : f32 to vector<8x128xf32>
    %209 = arith.mulf %208, %17 : vector<8x128xf32>
    %210 = arith.mulf %209, %17 : vector<8x128xf32>
    %211 = arith.subf %74, %35 : vector<8x128xf32>
    %212 = arith.mulf %211, %211 : vector<8x128xf32>
    %213 = arith.subf %77, %38 : vector<8x128xf32>
    %214 = arith.mulf %213, %213 : vector<8x128xf32>
    %215 = arith.addf %212, %214 : vector<8x128xf32>
    %216 = arith.subf %80, %41 : vector<8x128xf32>
    %217 = arith.mulf %216, %216 : vector<8x128xf32>
    %218 = arith.addf %215, %217 : vector<8x128xf32>
    %219 = arith.subf %83, %44 : vector<8x128xf32>
    %220 = arith.mulf %219, %219 : vector<8x128xf32>
    %221 = arith.addf %218, %220 : vector<8x128xf32>
    %222 = arith.addf %175, %191 : vector<8x128xf32>
    %223 = arith.addf %222, %202 : vector<8x128xf32>
    %224 = arith.addf %223, %207 : vector<8x128xf32>
    %225 = arith.addf %182, %200 : vector<8x128xf32>
    %226 = arith.addf %225, %204 : vector<8x128xf32>
    %227 = arith.addf %226, %210 : vector<8x128xf32>
    %228 = arith.select %168, %224, %227 : vector<8x128xi1>, vector<8x128xf32>
    %229 = arith.addf %228, %221 : vector<8x128xf32>
    %230 = arith.mulf %17, %17 : vector<8x128xf32>
    %231 = arith.mulf %32, %32 : vector<8x128xf32>
    %232 = arith.addf %230, %231 : vector<8x128xf32>
    %cst_66 = arith.constant 5.000000e-01 : f32
    %233 = vector.broadcast %cst_66 : f32 to vector<8x128xf32>
    %234 = arith.mulf %233, %232 : vector<8x128xf32>
    %cst_67 = arith.constant 1.000000e+00 : f32
    %235 = vector.broadcast %cst_67 : f32 to vector<8x128xf32>
    %236 = arith.cmpf oeq, %59, %235 : vector<8x128xf32>
    %237 = arith.select %236, %229, %234 : vector<8x128xi1>, vector<8x128xf32>
    %238 = arith.addf %0, %237 : vector<8x128xf32>
    %c1_i32 = arith.constant 1 : i32
    %c0_68 = arith.constant 0 : index
    %c0_69 = arith.constant 0 : index
    %239 = vector.load %arg3[%c0_68, %c0_69] : memref<8x128xf32, #tpu.memory_space<vmem>>, vector<8x128xf32>
    tpu.vector_store %arg3[%c0_68, %c0_69], %238 {strides = array<i32>} : memref<8x128xf32, #tpu.memory_space<vmem>>, vector<8x128xf32>,
    return
  }
  func.func @transform_0(%arg0: i32) -> (i32, i32, i32) {
    %c0_i32 = arith.constant 0 : i32
    %c0_i32_0 = arith.constant 0 : i32
    %c0_i32_1 = arith.constant 0 : i32
    return %c0_i32, %arg0, %c0_i32_0 : i32, i32, i32
  }
  func.func @transform_1(%arg0: i32) -> (i32, i32, i32) {
    %c0_i32 = arith.constant 0 : i32
    %c0_i32_0 = arith.constant 0 : i32
    %c0_i32_1 = arith.constant 0 : i32
    return %c0_i32, %arg0, %c0_i32_0 : i32, i32, i32
  }
  func.func @transform_2(%arg0: i32) -> (i32, i32) {
    %c0_i32 = arith.constant 0 : i32
    %c0_i32_0 = arith.constant 0 : i32
    return %arg0, %c0_i32 : i32, i32
  }
}

</mosaic_0001>

<bundles_post_ra>
// kernel: yolo_loss_pallas.1
= control target key start
LH: loop header
LB: loop body
LE: loop exit
PB: predicated region body
PF: predicated region fallthrough
CT: control target
= control target key end

     0   :  { %s538_s0 = inlined_call_operand.vmem [shape: f32[14,8,128], index: 0, kind: input, shape index: {}]   ;;  %s539_s1 = inlined_call_operand.vmem [shape: f32[14,8,128], index: 1, kind: input, shape index: {}]   ;;  %s540_s2 = inlined_call_operand.vmem [shape: f32[8,128], index: 2, kind: output, shape index: {}]  }
   0x1   :  { %v331_v0 = vld [vmem:[%s538_s0 + $0x10] sm:$0xff]  ;;  %v336_v1 = vld [vmem:[%s538_s0] sm:$0xff]  ;;  %v341_v2 = vld [vmem:[%s538_s0 + $0x18] sm:$0xff] }
   0x2   :  { %v76_v3 = vmul.f32 0.5, %v331_v0  ;;  %v347_v4 = vld [vmem:[%s538_s0 + $0x8] sm:$0xff]  ;;  %v352_v5 = vld [vmem:[%s538_s0 + $0x38] sm:$0xff]  ;;  %v357_v6 = vld [vmem:[%s538_s0 + $0x40] sm:$0xff]  ;;  %v79_v7 = vmul.f32 0.5, %v341_v2  ;;  %293 = vrsqrt.f32 %v331_v0  ;;  %v97_v30 = vmul.f32 %v341_v2, %v331_v0 }
   0x3   :  { %v363_v8 = vld [vmem:[%s538_s0 + $0x28] sm:$0xff]  ;;  %v104_v9 = vmul.f32 0.5, %v352_v5  ;;  %v107_v10 = vmul.f32 0.5, %v357_v6  ;;  %v370_v11 = vld [vmem:[%s538_s0 + $0x30] sm:$0xff]  ;;  %v51_v12 = vld [vmem:[%s539_s1] sm:$0xff]  ;;  %295 = vrsqrt.f32 %v341_v2  ;;  %v119_v32 = vmul.f32 %v357_v6, %v352_v5 }
   0x4   :  { %v281_v13 = vld [vmem:[%s539_s1 + $0x8] sm:$0xff]  ;;  %v382_v14 = vld [vmem:[%s539_s1 + $0x10] sm:$0xff]  ;;  %v387_v15 = vld [vmem:[%s539_s1 + $0x18] sm:$0xff]  ;;  %v77_v16 = vsub.f32 %v336_v1, %v76_v3  ;;  %v78_v17 = vadd.f32 %v76_v3, %v336_v1  ;;  %v80_v18 = vsub.f32 %v347_v4, %v79_v7  ;;  %v81_v19 = vadd.f32 %v347_v4, %v79_v7 }
   0x5   :  { %v82_v20 = vmul.f32 0.5, %v382_v14  ;;  %v85_v21 = vmul.f32 0.5, %v387_v15  ;;  %v105_v22 = vsub.f32 %v363_v8, %v104_v9  ;;  %v106_v23 = vadd.f32 %v363_v8, %v104_v9  ;;  %v410_v51 = vld [vmem:[%s539_s1 + $0x38] sm:$0xff]  ;;  %v425_v63 = vld [vmem:[%s539_s1 + $0x40] sm:$0xff]  ;;  %v285_v9 = vld [vmem:[%s539_s1 + $0x28] sm:$0xff] }
   0x6   :  { %v108_v24 = vsub.f32 %v370_v11, %v107_v10  ;;  %v109_v25 = vadd.f32 %v370_v11, %v107_v10  ;;  %297 = vrsqrt.f32 %v382_v14  ;;  %v98_v31 = vmul.f32 %v387_v15, %v382_v14  ;;  %v286_v10 = vld [vmem:[%s539_s1 + $0x30] sm:$0xff] }
   0x7   :  { %v83_v26 = vsub.f32 %v51_v12, %v82_v20  ;;  %v84_v27 = vadd.f32 %v82_v20, %v51_v12  ;;  %v86_v28 = vsub.f32 %v281_v13, %v85_v21  ;;  %v87_v29 = vadd.f32 %v281_v13, %v85_v21 }
   0x8   :  { %v99_v47 = vadd.f32 %v98_v31, %v97_v30  ;;  %v120_v50 = vadd.f32 %v119_v32, %v98_v31  ;;  %299 = vrsqrt.f32 %v387_v15  ;;  %v126_v61 = vsub.f32 %v51_v12, %v336_v1 }
   0x9   :  { %v88_v33 = vmin.f32 %v78_v17, %v84_v27  ;;  %v89_v34 = vmax.f32 %v77_v16, %v83_v26  ;;  %v92_v35 = vmin.f32 %v81_v19, %v87_v29  ;;  %v93_v36 = vmax.f32 %v80_v18, %v86_v28 }
   0xa   :  { %v110_v37 = vmin.f32 %v106_v23, %v84_v27  ;;  %v111_v38 = vmax.f32 %v105_v22, %v83_v26  ;;  %v114_v39 = vmin.f32 %v109_v25, %v87_v29  ;;  %v115_v40 = vmax.f32 %v108_v24, %v86_v28 }
   0xb   :  { %v90_v41 = vsub.f32 %v88_v33, %v89_v34  ;;  %v94_v42 = vsub.f32 %v92_v35, %v93_v36  ;;  %301 = vrsqrt.f32 %v410_v51  ;;  %v128_v62 = vsub.f32 %v281_v13, %v347_v4  ;;  %v278_v33 = vld [vmem:[%s538_s0 + $0x58] sm:$0xff]  ;;  %v289_v34 = vld [vmem:[%s539_s1 + $0x50] sm:$0xff] }
   0xc   :  { %v112_v43 = vsub.f32 %v110_v37, %v111_v38  ;;  %v116_v44 = vsub.f32 %v114_v39, %v115_v40  ;;  %vm140_vm0 = vcmp.eq.f32.partialorder %v382_v14, inf  ;;  %vm147_vm1 = vcmp.eq.f32.partialorder %v331_v0, inf }
   0xd   :  { %v91_v45 = vmax.f32 %v90_v41, 0.0  ;;  %v95_v46 = vmax.f32 %v94_v42, 0.0  ;;  %vm149_vm2 = vcmp.eq.f32.partialorder %v331_v0, 0.0  ;;  %v150_v1 = vand.u32 2147483648, %v331_v0  ;;  %v279_v41 = vld [vmem:[%s538_s0 + $0x60] sm:$0xff] }
   0xe   :  { %v113_v48 = vmax.f32 %v112_v43, 0.0  ;;  %v117_v49 = vmax.f32 %v116_v44, 0.0  ;;  %vm163_vm3 = vcmp.eq.f32.partialorder %v341_v2, inf  ;;  %v127_v12 = vmul.f32 %v126_v61, %v126_v61  ;;  %v291_v42 = vld [vmem:[%s539_s1 + $0x60] sm:$0xff] }
   0xf   :  { %v412_v52 = vmul.f32 %v95_v46, %v91_v45  ;;  %v294_v53 = vpop.eup %293  ;;  %v129_v13 = vmul.f32 %v128_v62, %v128_v62  ;;  %v143_v16 = vand.u32 2147483648, %v382_v14  ;;  %vm142_vm4 = vcmp.eq.f32.partialorder %v382_v14, 0.0  ;;  %v276_v62 = vld [vmem:[%s538_s0 + $0x48] sm:$0xff] }
  0x10   :  { %v415_v54 = vmul.f32 %v117_v49, %v113_v48  ;;  %v296_v55 = vpop.eup %295  ;;  %v146_v7 = vmul.f32 %v294_v53, %v331_v0  ;;  %v166_v19 = vand.u32 2147483648, %v341_v2  ;;  %v132_v20 = vsub.f32 %v285_v9, %v363_v8  ;;  %v271_v48 = vld [vmem:[%s538_s0 + $0x20] sm:$0xff] }
  0x11   :  { %v100_v56 = vsub.f32 %v99_v47, %v412_v52  ;;  %v162_v4 = vmul.f32 %v296_v55, %v341_v2  ;;  %v134_v21 = vsub.f32 %v286_v10, %v370_v11  ;;  %vm165_vm5 = vcmp.eq.f32.partialorder %v341_v2, 0.0 }
  0x12   :  { %v121_v57 = vsub.f32 %v120_v50, %v415_v54  ;;  %v148_v18 = vsel %vm147_vm1, %v331_v0, %v146_v7  ;;  %vm156_vm6 = vcmp.eq.f32.partialorder %v387_v15, inf  ;;  %v130_v26 = vadd.f32 %v129_v13, %v127_v12  ;;  %v277_v0 = vld [vmem:[%s538_s0 + $0x50] sm:$0xff]  ;;  %v280_v12 = vld [vmem:[%s538_s0 + $0x68] sm:$0xff] }
  0x13   :  { %v298_v58 = vpop.eup %297  ;;  %v101_v59 = vadd.f32 1e-06, %v100_v56  ;;  %v164_v22 = vsel %vm163_vm3, %v341_v2, %v162_v4  ;;  %v151_v25 = vsel %vm149_vm2, %v150_v1, %v148_v18  ;;  %vm158_vm7 = vcmp.eq.f32.partialorder %v387_v15, 0.0  ;;  %v292_v13 = vld [vmem:[%s539_s1 + $0x68] sm:$0xff] }
  0x14   :  { %v122_v60 = vadd.f32 1e-06, %v121_v57  ;;  %v139_v3 = vmul.f32 %v298_v58, %v382_v14  ;;  %v167_v8 = vsel %vm165_vm5, %v166_v19, %v164_v22  ;;  %v133_v28 = vmul.f32 %v132_v20, %v132_v20 }
  0x15   :  { %303 = vrcp.f32 %v101_v59  ;;  %v300_v23 = vpop.eup %299  ;;  %v135_v30 = vmul.f32 %v134_v21, %v134_v21  ;;  %vm173_vm8 = vcmp.eq.f32.partialorder %v410_v51, inf  ;;  %v131_v35 = vmul.f32 5.0, %v130_v26 }
  0x16   :  { %305 = vrcp.f32 %v122_v60  ;;  %v141_v17 = vsel %vm140_vm0, %v382_v14, %v139_v3  ;;  %v159_v14 = vand.u32 2147483648, %v387_v15  ;;  %v155_v27 = vmul.f32 %v300_v23, %v387_v15 }
  0x17   :  { %307 = vrsqrt.f32 %v352_v5  ;;  %v144_v24 = vsel %vm142_vm4, %v143_v16, %v141_v17  ;;  %vm175_vm9 = vcmp.eq.f32.partialorder %v410_v51, 0.0  ;;  %v176_v37 = vand.u32 2147483648, %v410_v51 }
  0x18   :  { %309 = vrsqrt.f32 %v425_v63  ;;  %v302_v11 = vpop.eup %301  ;;  %v152_v29 = vsub.f32 %v144_v24, %v151_v25  ;;  %v157_v2 = vsel %vm156_vm6, %v387_v15, %v155_v27  ;;  %v290_v15 = vld [vmem:[%s539_s1 + $0x58] sm:$0xff]  ;;  %vm180_vm10 = vcmp.eq.f32.partialorder %v352_v5, inf }
  0x19   :  { %311 = vrsqrt.f32 %v357_v6  ;;  %v160_v31 = vsel %vm158_vm7, %v159_v14, %v157_v2  ;;  %v172_v32 = vmul.f32 %v302_v11, %v410_v51  ;;  %vm182_vm11 = vcmp.eq.f32.partialorder %v352_v5, 0.0 }
  0x1a   :  { %v168_v36 = vsub.f32 %v160_v31, %v167_v8  ;;  %v183_v39 = vand.u32 2147483648, %v352_v5  ;;  %vm189_vm12 = vcmp.eq.f32.partialorder %v425_v63, inf  ;;  %v153_v44 = vmul.f32 %v152_v29, %v152_v29 }
  0x1b   :  { %v174_v46 = vsel %vm173_vm8, %v410_v51, %v172_v32  ;;  %vm191_vm13 = vcmp.eq.f32.partialorder %v425_v63, 0.0  ;;  %v192_v49 = vand.u32 2147483648, %v425_v63  ;;  %v212_v50 = vsub.f32 %v289_v34, %v277_v0 }
  0x1c   :  { %v169_v45 = vmul.f32 %v168_v36, %v168_v36  ;;  %v214_v53 = vsub.f32 %v290_v15, %v278_v33  ;;  %vm196_vm14 = vcmp.eq.f32.partialorder %v357_v6, inf  ;;  %vm198_vm15 = vcmp.eq.f32.partialorder %v357_v6, 0.0 }
  0x1d   :  { %v199_v56 = vand.u32 2147483648, %v357_v6  ;;  %v177_v59 = vsel %vm175_vm9, %v176_v37, %v174_v46  ;;  %v217_v61 = vsub.f32 %v291_v42, %v279_v41  ;;  %v213_v9 = vmul.f32 %v212_v50, %v212_v50 }
  0x1e   :  { %v170_v3 = vadd.f32 %v169_v45, %v153_v44  ;;  %v215_v10 = vmul.f32 %v214_v53, %v214_v53  ;;  %v136_v16 = vadd.f32 %v135_v30, %v133_v28  ;;  %v208_v21 = vmul.f32 0.5, %v276_v62 }
  0x1f   :  { %v218_v26 = vmul.f32 %v217_v61, %v217_v61  ;;  %v220_v27 = vsub.f32 %v292_v13, %v280_v12  ;;  %v231_v28 = vmul.f32 %v271_v48, %v271_v48  ;;  %v232_v29 = vmul.f32 %v276_v62, %v276_v62 }
  0x20   :  { %v223_v25 = vadd.f32 %v170_v3, %v131_v35  ;;  %v216_v14 = vadd.f32 %v215_v10, %v213_v9  ;;  %v137_v8 = vmul.f32 5.0, %v136_v16  ;;  %v209_v30 = vmul.f32 %v276_v62, %v208_v21  ;;  %v284_v35 = vld [vmem:[%s539_s1 + $0x20] sm:$0xff] }
  0x21   :  { %v221_v32 = vmul.f32 %v220_v27, %v220_v27  ;;  %v233_v15 = vadd.f32 %v232_v29, %v231_v28  ;;  %vm235_vm1 = vcmp.eq.f32.partialorder %v284_v35, 1.0 }
  0x22   :  { %v304_v38 = vpop.eup %303 }
  0x23   :  { %v306_v40 = vpop.eup %305  ;;  %v487_v43 = vmul.f32 %v304_v38, %v412_v52 }
  0x24   :  { %v308_v47 = vpop.eup %307  ;;  %v124_v58 = vmul.f32 %v306_v40, %v415_v54  ;;  %v234_v40 = vmul.f32 0.5, %v233_v15 }
  0x25   :  { %v310_v55 = vpop.eup %309  ;;  %v179_v52 = vmul.f32 %v308_v47, %v352_v5  ;;  %v204_v4 = vsub.f32 %v487_v43, %v271_v48 }
  0x26   :  { %v312_v57 = vpop.eup %311  ;;  %v188_v60 = vmul.f32 %v310_v55, %v425_v63  ;;  %v206_v20 = vsub.f32 %v124_v58, %v276_v62  ;;  %vm125_vm0 = vcmp.gt.f32.partialorder %v487_v43, %v124_v58 }
  0x27   :  { %v181_v7 = vsel %vm180_vm10, %v352_v5, %v179_v52  ;;  %v195_v1 = vmul.f32 %v312_v57, %v357_v6  ;;  %v205_v24 = vmul.f32 %v204_v4, %v204_v4 }
  0x28   :  { %v184_v51 = vsel %vm182_vm11, %v183_v39, %v181_v7  ;;  %v190_v54 = vsel %vm189_vm12, %v425_v63, %v188_v60  ;;  %v210_v63 = vmul.f32 0.5, %v271_v48  ;;  %v207_v0 = vmul.f32 %v206_v20, %v206_v20 }
  0x29   :  { %v185_v17 = vsub.f32 %v177_v59, %v184_v51  ;;  %v193_v5 = vsel %vm191_vm13, %v192_v49, %v190_v54  ;;  %v197_v18 = vsel %vm196_vm14, %v357_v6, %v195_v1  ;;  %v224_v31 = vadd.f32 %v223_v25, %v205_v24 }
  0x2a   :  { %v200_v19 = vsel %vm198_vm15, %v199_v56, %v197_v18  ;;  %v219_v6 = vadd.f32 %v218_v26, %v216_v14  ;;  %v211_v33 = vmul.f32 %v271_v48, %v210_v63 }
  0x2b   :  { %v186_v22 = vmul.f32 %v185_v17, %v185_v17  ;;  %v201_v23 = vsub.f32 %v193_v5, %v200_v19  ;;  %v225_v36 = vadd.f32 %v224_v31, %v209_v30 }
  0x2c   :  { %v222_v38 = vadd.f32 %v221_v32, %v219_v6 }
  0x2d   :  { %v202_v11 = vmul.f32 %v201_v23, %v201_v23 }
  0x2f   :  { %v203_v2 = vadd.f32 %v202_v11, %v186_v22 }
  0x31   :  { %v226_v34 = vadd.f32 %v203_v2, %v137_v8 }
  0x33   :  { %v227_v37 = vadd.f32 %v226_v34, %v207_v0 }
  0x35   :  { %v228_v39 = vadd.f32 %v227_v37, %v211_v33 }
  0x37   :  { %v229_v41 = vsel %vm125_vm0, %v225_v36, %v228_v39 }
  0x38   :  { %v230_v42 = vadd.f32 %v229_v41, %v222_v38 }
  0x3a   :  { %v236_v44 = vsel %vm235_vm1, %v230_v42, %v234_v40 }
  0x3b   :  { %238 = vst [vmem:[%s540_s2] sm:$0xff] %v236_v44 }

</bundles_post_ra>
